<compile_context>
chip_gen: v6e
topology: v6e:2x2x1
jax: 0.10.0
libtpu: 0.0.40
codegen_flags: <defaults>
</compile_context>

<pallas_src>
import functools

import jax
import jax.numpy as jnp
from jax.experimental import pallas as pl
from jax.experimental.pallas import tpu as pltpu


def _hop_gnn_kernel(xt_ref, w_ref, o_ref, *, nnode, lane_tile):
    # xt_ref: (2*nin, lane_tile)  packed [x ; t]; lane l = b*nnode + node
    # w_ref : (nou, 2*nin)        fused weight (Wn + I | Wt)^T, whole array in VMEM
    # o_ref : (nou, lane_tile)
    nin = xt_ref.shape[0] // 2

    # Single fused MXU call (K = 2*nin); the identity folded into Wn carries
    # the residual, so no separate full-tile add is needed.
    upd = jnp.dot(w_ref[...], xt_ref[...], preferred_element_type=jnp.float32)

    # Node 0 of every batch receives no update -> output is just x there.
    lane0 = pl.program_id(0) * lane_tile
    lane = jax.lax.broadcasted_iota(jnp.int32, upd.shape, 1) + lane0
    is_node0 = (lane % nnode) == 0
    x = xt_ref[0:nin, :].astype(jnp.float32)          # nin == nou (module invariant)
    o_ref[...] = jnp.where(is_node0, x, upd).astype(o_ref.dtype)


def _pick_lane_tile(total_lanes):
    """Tile for the packed batch*node (lane) axis.

    Small extents -> one grid step (no pipeline overhead; the right choice for
    single-TensorCore v5e/v6e and for tiny shapes on any chip).  Large extents
    -> lane-dense multiples of 128; 2048 keeps the double-buffered working set
    well inside v7x's 64 MiB VMEM for realistic channel widths and gives the
    megacore an even number of 'parallel' steps.
    """
    if total_lanes <= 4096:
        return total_lanes
    for tn in (2048, 1024, 512, 256, 128):
        if total_lanes % tn == 0:
            return tn
    return total_lanes  # ragged extent: fall back to a single full-width step


def hop_gnn_op_forward(nfeature, tfeature, nfilter, tfilter, *,
                       lane_tile=None, compute_dtype=jnp.float32):
    """nfeature/tfeature: (B, nin, nnode, 1); nfilter/tfilter: (1, nin, nou)."""
    B, nin, nnode, w = nfeature.shape
    assert w == 1
    nou = nfilter.shape[-1]
    assert nin == nou, "module semantics (residual add) require nin == nou"

    # Lane-dense channel-major packing: (B, nin, nnode, 1) -> (nin, B*nnode),
    # then stack x over t along channels so the kernel needs NO staging copy.
    x_p = jnp.transpose(nfeature[..., 0], (1, 0, 2)).reshape(nin, B * nnode)
    t_p = jnp.transpose(tfeature[..., 0], (1, 0, 2)).reshape(nin, B * nnode)
    xt = jnp.concatenate([x_p, t_p], axis=0).astype(compute_dtype)   # (2*nin, L)

    # Fused, pre-transposed weight with the residual identity folded in:
    #   out_col = (Wn + I)^T x_col + Wt^T t_col = x_col + Wn^T x_col + Wt^T t_col
    eye = jnp.eye(nin, dtype=jnp.float32)
    w_fused_t = jnp.concatenate([nfilter[0] + eye, tfilter[0]],
                                axis=0).T.astype(compute_dtype)       # (nou, 2*nin)

    L = B * nnode
    tn = lane_tile or _pick_lane_tile(L)
    assert L % tn == 0
    grid = (L // tn,)

    # Explicit VMEM budget: double-buffered input+output blocks + the weight.
    isz = jnp.dtype(compute_dtype).itemsize
    block_bytes = 2 * nin * tn * isz + nou * tn * 4
    vmem_budget = int(min(max(2 * block_bytes + w_fused_t.size * isz + (4 << 20),
                              16 << 20), 64 << 20))

    kernel = functools.partial(_hop_gnn_kernel, nnode=nnode, lane_tile=tn)
    out_packed = pl.pallas_call(
        kernel,
        out_shape=jax.ShapeDtypeStruct((nou, L), jnp.float32),
        grid_spec=pltpu.PrefetchScalarGridSpec(
            num_scalar_prefetch=0,
            grid=grid,
            in_specs=[
                pl.BlockSpec((2 * nin, tn), lambda n: (0, n)),
                pl.BlockSpec(memory_space=pltpu.MemorySpace.VMEM),  # whole weight, unpipelined
            ],
            out_specs=pl.BlockSpec((nou, tn), lambda n: (0, n)),
        ),
        compiler_params=pltpu.CompilerParams(
            dimension_semantics=("parallel",),
            vmem_limit_bytes=vmem_budget),
    )(xt, w_fused_t)

    # (nou, B*nnode) -> (B, nou, nnode) -> (B, nou, nnode, 1)
    return jnp.transpose(out_packed.reshape(nou, B, nnode), (1, 0, 2))[..., None]


def _reference(nfeature, tfeature, nfilter, tfilter):
    """Pure-JAX reference matching the PyTorch module exactly."""
    B, nin, nnode, _ = nfeature.shape
    nou = nfilter.shape[-1]
    x = jnp.transpose(nfeature[..., 0], (0, 2, 1))     # (B, nnode, nin)
    t = jnp.transpose(tfeature[..., 0], (0, 2, 1))
    mask = jnp.ones((B, nnode, nou), jnp.float32).at[:, 0].set(0.0)
    upd = jnp.einsum("bnc,co->bno", x, nfilter[0]) + \
          jnp.einsum("bnc,co->bno", t, tfilter[0])
    out = x + mask * upd
    return jnp.transpose(out, (0, 2, 1))[..., None]


if __name__ == "__main__":
    B, nin, nou, nnode = 2, 32, 32, 16

    key = jax.random.PRNGKey(0)
    k1, k2, k3, k4 = jax.random.split(key, 4)
    nfeature = jax.random.normal(k1, (B, nin, nnode, 1), dtype=jnp.float32)
    tfeature = jax.random.normal(k2, (B, nin, nnode, 1), dtype=jnp.float32)
    # deterministic uniform(-0.01, 0.01) init, matching the module's __init__
    nfilter = jax.random.uniform(k3, (1, nin, nou), jnp.float32, -0.01, 0.01)
    tfilter = jax.random.uniform(k4, (1, nin, nou), jnp.float32, -0.01, 0.01)

    out = hop_gnn_op_forward(nfeature, tfeature, nfilter, tfilter)
    out = jax.block_until_ready(out)

    ref = _reference(nfeature, tfeature, nfilter, tfilter)
    assert out.shape == (B, nou, nnode, 1), out.shape
    assert jnp.allclose(out, ref, atol=1e-5, rtol=1e-5), "mismatch vs reference"

    print("KERNEL_OK")
</pallas_src>

<mosaic_0001>
module attributes {stable_mosaic.version = 11 : i64} {
  func.func @_hop_gnn_kernel(%arg0: i32, %arg1: memref<64x32xf32, #tpu.memory_space<vmem>>, %arg2: memref<32x64xf32, #tpu.memory_space<vmem>>, %arg3: memref<32x32xf32, #tpu.memory_space<vmem>>) attributes {dimension_semantics = [#tpu.dimension_semantics<parallel>], iteration_bounds = array<i64: 1>, scalar_prefetch = 0 : i64, scratch_operands = 0 : i64, tpu.core_type = #tpu.core_type<tc>, window_params = [{transform_indices = @transform_0, window_bounds = array<i64: 64, 32>}, {pipeline_mode = #tpu.pipeline_mode<synchronous>, transform_indices = @transform_1, window_bounds = array<i64: 32, 64>}, {transform_indices = @transform_2, window_bounds = array<i64: 32, 32>}]} {
    %c0 = arith.constant 0 : index
    %c0_0 = arith.constant 0 : index
    %0 = vector.load %arg2[%c0, %c0_0] : memref<32x64xf32, #tpu.memory_space<vmem>>, vector<32x64xf32>
    %c0_1 = arith.constant 0 : index
    %c0_2 = arith.constant 0 : index
    %1 = vector.load %arg1[%c0_1, %c0_2] : memref<64x32xf32, #tpu.memory_space<vmem>>, vector<64x32xf32>
    %cst = arith.constant dense<0.000000e+00> : vector<32x32xf32>
    %2 = tpu.matmul %0, %1, %cst {dimension_numbers = #tpu.dot_dimension_numbers<[1], [0], [0], [1], [0, 0, 1, 1], [], []>} : vector<32x64xf32>, vector<64x32xf32>, vector<32x32xf32> -> vector<32x32xf32>
    %c32_i32 = arith.constant 32 : i32
    %3 = arith.muli %arg0, %c32_i32 : i32
    %4 = tpu.iota {dimensions = array<i32: 1>} : vector<32x32xi32>
    %5 = vector.broadcast %3 : i32 to vector<32x32xi32>
    %6 = arith.addi %4, %5 : vector<32x32xi32>
    %c16_i32 = arith.constant 16 : i32
    %c0_i32 = arith.constant 0 : i32
    %7 = arith.cmpi eq, %c16_i32, %c0_i32 : i32
    %c1_i32 = arith.constant 1 : i32
    %8 = arith.select %7, %c1_i32, %c16_i32 : i32
    %9 = vector.broadcast %8 : i32 to vector<32x32xi32>
    %10 = arith.remsi %6, %9 : vector<32x32xi32>
    %c0_i32_3 = arith.constant 0 : i32
    %11 = vector.broadcast %c0_i32_3 : i32 to vector<32x32xi32>
    %12 = arith.cmpi ne, %10, %11 : vector<32x32xi32>
    %c0_i32_4 = arith.constant 0 : i32
    %13 = vector.broadcast %c0_i32_4 : i32 to vector<32x32xi32>
    %14 = arith.cmpi slt, %10, %13 : vector<32x32xi32>
    %c0_i32_5 = arith.constant 0 : i32
    %15 = arith.cmpi slt, %8, %c0_i32_5 : i32
    %16 = vector.broadcast %15 : i1 to vector<32x32xi1>
    %17 = vector.broadcast %16 : vector<32x32xi1> to vector<32x32xi1>
    %18 = arith.xori %14, %17 : vector<32x32xi1>
    %19 = arith.andi %18, %12 : vector<32x32xi1>
    %20 = vector.broadcast %8 : i32 to vector<32x32xi32>
    %21 = arith.addi %10, %20 : vector<32x32xi32>
    %22 = arith.select %19, %21, %10 : vector<32x32xi1>, vector<32x32xi32>
    %c0_i32_6 = arith.constant 0 : i32
    %23 = vector.broadcast %c0_i32_6 : i32 to vector<32x32xi32>
    %24 = arith.cmpi eq, %22, %23 : vector<32x32xi32>
    %c0_7 = arith.constant 0 : index
    %c0_8 = arith.constant 0 : index
    %25 = vector.load %arg1[%c0_7, %c0_8] : memref<64x32xf32, #tpu.memory_space<vmem>>, vector<32x32xf32>
    %26 = arith.select %24, %25, %2 : vector<32x32xi1>, vector<32x32xf32>
    %c0_9 = arith.constant 0 : index
    %c0_10 = arith.constant 0 : index
    %27 = vector.load %arg3[%c0_9, %c0_10] : memref<32x32xf32, #tpu.memory_space<vmem>>, vector<32x32xf32>
    tpu.vector_store %arg3[%c0_9, %c0_10], %26 {strides = array<i32>} : memref<32x32xf32, #tpu.memory_space<vmem>>, vector<32x32xf32>,
    return
  }
  func.func @transform_0(%arg0: i32) -> (i32, i32) {
    %c0_i32 = arith.constant 0 : i32
    %c0_i32_0 = arith.constant 0 : i32
    return %c0_i32, %arg0 : i32, i32
  }
  func.func @transform_1(%arg0: i32) -> (i32, i32) {
    %c0_i32 = arith.constant 0 : i32
    %c0_i32_0 = arith.constant 0 : i32
    %c0_i32_1 = arith.constant 0 : i32
    return %c0_i32, %c0_i32_0 : i32, i32
  }
  func.func @transform_2(%arg0: i32) -> (i32, i32) {
    %c0_i32 = arith.constant 0 : i32
    %c0_i32_0 = arith.constant 0 : i32
    return %c0_i32, %arg0 : i32, i32
  }
}

</mosaic_0001>

<bundles_post_ra>
// kernel: tpu_custom_call.1
= control target key start
LH: loop header
LB: loop body
LE: loop exit
PB: predicated region body
PF: predicated region fallthrough
CT: control target
= control target key end

     0   :  { %s317_s0 = inlined_call_operand.vmem [shape: f32[64,32], index: 0, kind: input, shape index: {}]   ;;  %s318_s1 = inlined_call_operand.vmem [shape: f32[32,64], index: 1, kind: input, shape index: {}]   ;;  %s319_s2 = inlined_call_operand.hbm [shape: f32[32,32], index: 2, kind: output, shape index: {}]  }
   0x1   :  { %v23_v0 = vld [vmem:[%s317_s0 + $0x38] sm:$0xff]  ;;  %v22_v1 = vld [vmem:[%s317_s0 + $0x30] sm:$0xff]  ;;  %v21_v2 = vld [vmem:[%s317_s0 + $0x28] sm:$0xff] }
   0x2   :  { %185 = vmatprep.subr.mxu0 %v23_v0  ;;  %207 = vmatprep.subr.mxu1 %v23_v0  ;;  %v20_v3 = vld [vmem:[%s317_s0 + $0x20] sm:$0xff] }
   0x3   :  { %186 = vmatpush3.msra.mxu0 %v23_v0  ;;  %215 = vmatpush3.msra.mxu1 %v23_v0 }
   0x4   :  { %187 = vmatprep.subr.mxu0 %v22_v1  ;;  %208 = vmatprep.subr.mxu1 %v22_v1 }
   0x5   :  { %188 = vmatpush3.msra.mxu0 %v22_v1  ;;  %216 = vmatpush3.msra.mxu1 %v22_v1 }
   0x6   :  { %7 = vsyncpa [#allocation3], 0  ;;  %189 = vmatprep.subr.mxu0 %v21_v2  ;;  %209 = vmatprep.subr.mxu1 %v21_v2  ;;  %v19_v4 = vld [vmem:[%s317_s0 + $0x18] sm:$0xff]  ;;  %v18_v5 = vld [vmem:[%s317_s0 + $0x10] sm:$0xff]  ;;  %vm24_vm0 = vcmask 523264   ;;  %v123_v12 = vlaneseq  ;;  %s248_s4 = smov [#allocation2]  }
   0x7   :  { %190 = vmatpush3.msra.mxu0 %v21_v2  ;;  %217 = vmatpush3.msra.mxu1 %v21_v2  ;;  %v17_v6 = vld [vmem:[%s317_s0 + $0x8] sm:$0xff]  ;;  %v16_v7 = vld [vmem:[%s317_s0] sm:$0xff]  ;;  %v14_v9 = vld [vmem:[%s318_s1 + $0x10] sm:$0xff]  ;;  %s158_s5 = sshll.u32 %s248_s4, 4  ;;  %vm148_vm2 = vcmask 261120   ;;  %s159_s5 = int_to_ptr.vmem [resolvable:$true] %s158_s5 }
   0x8   :  { %191 = vmatprep.subr.mxu0 %v20_v3  ;;  %210 = vmatprep.subr.mxu1 %v20_v3  ;;  %v12_v8 = vld [vmem:[%s318_s1] sm:$0xff]  ;;  %v13_v10 = vld [vmem:[%s318_s1 + $0x8] sm:$0xff]  ;;  %v15_v11 = vld [vmem:[%s318_s1 + $0x18] sm:$0xff]  ;;  %v124_v13 = vand.u32 127, %v123_v12  ;;  %s226_s1 = scalar_lea.vmem %s159_s5, 512  ;;  %p231_p1 = scmp.lt.s32.totalorder %s159_s5, %s159_s5 }
   0x9   :  { %192 = vmatpush3.msra.mxu0 %v20_v3  ;;  %218 = vmatpush3.msra.mxu1 %v20_v3  ;;  %p227_p0 = scmp.ne.s32.totalorder %s159_s5, %s226_s1  ;;  %p232_p2 = scmp.lt.s32.totalorder %s226_s1, %s226_s1 }
   0xa   :  { %193 = vmatprep.subr.mxu0 %v19_v4  ;;  %211 = vmatprep.subr.mxu1 %v19_v4  ;;  %v131_v14 = vand.u32 15, %v124_v13 }
   0xb   :  { %194 = vmatpush3.msra.mxu0 %v19_v4  ;;  %219 = vmatpush3.msra.mxu1 %v19_v4  ;;  %p233_p3 = por %p232_p2, %p231_p1 }
   0xc   :  { %195 = vmatprep.subr.mxu0 %v18_v5  ;;  %212 = vmatprep.subr.mxu1 %v18_v5  ;;  %vm302_vm1 = vcmp.eq.s32.totalorder %v131_v14, 0 }
   0xd   :  { %196 = vmatpush3.msra.mxu0 %v18_v5  ;;  %220 = vmatpush3.msra.mxu1 %v18_v5  ;;  %p234_p4 = pnand %p233_p3, %p227_p0 }
   0xe   :  { %197 = vmatprep.subr.mxu0 %v17_v6  ;;  %213 = vmatprep.subr.mxu1 %v17_v6 }
   0xf   :  { %198 = vmatpush3.msra.mxu0 %v17_v6  ;;  %221 = vmatpush3.msra.mxu1 %v17_v6 }
  0x10   :  { %199 = vmatprep.subr.mxu0 %v16_v7  ;;  %214 = vmatprep.subr.mxu1 %v16_v7 }
  0x11   :  { %200 = vmatpush3.msra.mxu0 %v16_v7  ;;  %222 = vmatpush3.msra.mxu1 %v16_v7 }
  0x12   :  { %201 = vmatprep.mubr.msk.f32.mxu0 %vm24_vm0, %v12_v8  ;;  %204 = vmatprep.mubr.msk.f32.mxu1 %vm24_vm0, %v14_v9 }
  0x13   :  { %202 = vmatmul.mubr.msk.f32.vlgmr.msra.gmra.mxu0 %vm24_vm0, %v13_v10  ;;  %205 = vmatmul.mubr.msk.f32.vlgmr.msra.gmra.mxu1 %vm24_vm0, %v15_v11 }
  0xd3   :  { %v203_v16 = vpop.f32.mrf.mxu0  ;;  %v206_v17 = vpop.f32.mrf.mxu1 }
  0xd4   :  { %v145_v18 = vsel %vm302_vm1, %v17_v6, %v203_v16  ;;  %v147_v19 = vsel %vm302_vm1, %v19_v4, %v206_v17 }
  0xd5   :  { %150 = vst.msk [vmem:[#allocation2 + $0x8] sm:$0xff] %vm148_vm2, %v145_v18  ;;  %152 = vst.msk [vmem:[#allocation2 + $0x18] sm:$0xff] %vm148_vm2, %v147_v19  ;;  %v103_v20 = vpop.f32.mrf.mxu0  ;;  %v113_v21 = vpop.f32.mrf.mxu1 }
  0xd6   :  { %v144_v22 = vsel %vm302_vm1, %v16_v7, %v103_v20  ;;  %v146_v23 = vsel %vm302_vm1, %v18_v5, %v113_v21 }
  0xd7   :  { %149 = vst.msk [vmem:[#allocation2] sm:$0xff] %vm148_vm2, %v144_v22  ;;  %151 = vst.msk [vmem:[#allocation2 + $0x10] sm:$0xff] %vm148_vm2, %v146_v23 }
  0xd8   :  { %237 = shalt.err (!%p234_p4)
}
  0xd9   :  { %s249_s6 = smov 128   ;;  %s250_s7 = smov 8  }
  0xda   :  { %164 = dma.vmem_to_hbm [thread:$0]  %s159_s5, 512, %s319_s2, [#allocation3], %s249_s6, %s249_s6, %s250_s7  }
  0xdb   :  { %246 = dma.done.wait [#allocation3], 512  }
  0xdc   :  { %247 = vsyncadd [#allocation3], 4294966784 }
  0xdd   :  { %168 = vsyncpa [#allocation3], 1 }

</bundles_post_ra>
